<compile_context>
chip_gen: v7x
topology: tpu7x:2x2x1
jax: 0.10.0
libtpu: 0.0.40
codegen_flags: <defaults>
</compile_context>

<pallas_src>
import jax
import jax.numpy as jnp
from jax import lax
from jax.experimental import pallas as pl
from jax.experimental.pallas import tpu as pltpu


def _round_up(n, m):
    return ((n + m - 1) // m) * m


def _cdiv(a, b):
    return -(-a // b)


def _fc_mlp_kernel(x_ref, w1_ref, b1_ref, w2_ref, b2_ref, w3_ref, b3_ref, o_ref):
    # Per grid step (transposed orientation, B = tile_b lanes):
    #   x_ref : (in, B)   bf16     w1_ref: (H1p, in) bf16   b1_ref: (H1p, 1) f32
    #   w2_ref: (H2, H1p) bf16     b2_ref: (H2, 1)  f32
    #   w3_ref: (H2, out) f32      b3_ref: (out, 1) f32     o_ref: (out, B) f32
    x = x_ref[...]                                    # already bf16 (cast in wrapper)

    # fc1 + ReLU : (H1p, in) @ (in, B) -> (H1p, B), f32 accumulate on the MXU.
    h1 = jnp.dot(w1_ref[...], x, preferred_element_type=jnp.float32)
    h1 = jnp.maximum(h1 + b1_ref[...], 0.0)           # f32 bias/ReLU (v5e-safe)

    # fc2 + ReLU : (H2, H1p) @ (H1p, B) -> (H2, B)
    h2 = jnp.dot(w2_ref[...], h1.astype(jnp.bfloat16),
                 preferred_element_type=jnp.float32)
    h2 = jnp.maximum(h2 + b2_ref[...], 0.0)

    # fc3 (no activation). For a single output unit avoid a 1-lane MXU matmul:
    # elementwise multiply (VPU) + sublane reduction (XLU) is essentially free.
    if o_ref.shape[0] == 1:
        out = jnp.sum(h2 * w3_ref[...], axis=0, keepdims=True) + b3_ref[...]
    else:
        # (H2, out)^T @ (H2, B) -> (out, B)
        out = lax.dot_general(w3_ref[...], h2, (((0,), (0,)), ((), ())),
                              preferred_element_type=jnp.float32) + b3_ref[...]

    o_ref[...] = out.astype(o_ref.dtype)


def init_params(key, input_size, output_size=1):
    """PyTorch nn.Linear-style init (U[-1/sqrt(fan_in), 1/sqrt(fan_in)]).
    Weights stored (in_features, out_features) so y = x @ W + b == x @ W_pt.T + b."""
    def linear_init(k, fan_in, fan_out):
        kw, kb = jax.random.split(k)
        bound = 1.0 / jnp.sqrt(fan_in)
        w = jax.random.uniform(kw, (fan_in, fan_out), jnp.float32, -bound, bound)
        b = jax.random.uniform(kb, (1, fan_out), jnp.float32, -bound, bound)
        return w, b

    k1, k2, k3 = jax.random.split(key, 3)
    w1, b1 = linear_init(k1, input_size, 200)
    w2, b2 = linear_init(k2, 200, 20)
    w3, b3 = linear_init(k3, 20, output_size)
    return {"w1": w1, "b1": b1, "w2": w2, "b2": b2, "w3": w3, "b3": b3}


def prepare_params(params):
    """One-time prep: pad hidden 200->256 (full vregs / clean MXU passes),
    transpose to (feature, batch) orientation, cast the big weights to bf16
    (MXU operands); biases kept as f32 columns (v5e VPU has no bf16)."""
    w1, b1 = params["w1"], params["b1"]   # (in, 200), (1, 200)
    w2, b2 = params["w2"], params["b2"]   # (200, 20), (1, 20)
    w3, b3 = params["w3"], params["b3"]   # (20, out), (1, out)

    h1 = w1.shape[1]
    h1p = _round_up(h1, 128)              # 200 -> 256
    pad = h1p - h1
    w1p = jnp.pad(w1, ((0, 0), (0, pad)))
    b1p = jnp.pad(b1, ((0, 0), (0, pad)))
    w2p = jnp.pad(w2, ((0, pad), (0, 0)))

    return {
        "w1t": jnp.asarray(w1p.T, jnp.bfloat16),              # (H1p, in)
        "b1c": jnp.asarray(b1p.reshape(-1, 1), jnp.float32),  # (H1p, 1)
        "w2t": jnp.asarray(w2p.T, jnp.bfloat16),              # (H2, H1p)
        "b2c": jnp.asarray(b2.reshape(-1, 1), jnp.float32),   # (H2, 1)
        "w3":  jnp.asarray(w3, jnp.float32),                  # (H2, out) — tiny, keep f32
        "b3c": jnp.asarray(b3.reshape(-1, 1), jnp.float32),   # (out, 1)
    }


def _choose_tiling(batch, max_tile_b=4096):
    """Pick (tile_b, n_tiles, padded_batch).

    Goal: as few grid steps as possible (each step costs ~0.35 us of fixed
    Pallas overhead), but keep the tile count EVEN when the batch allows so
    the "parallel" batch axis shards across both v7x TensorCores (grid=1 would
    park one core there).  tile_b is capped so the per-step VMEM footprint
    (x double-buffer + out double-buffer + h1 intermediate) stays far below
    v7x's 32 MiB scoped / 64 MiB physical VMEM.
    """
    padded = _round_up(max(batch, 1), 128)
    n_tiles = _cdiv(padded, max_tile_b)
    if padded >= 256 and n_tiles % 2 == 1:
        n_tiles += 1                       # v7x megacore: even tile count
    tile_b = _round_up(_cdiv(padded, n_tiles), 128)
    padded = tile_b * n_tiles
    return tile_b, n_tiles, padded


def fc_model_forward(x, prepped, *, tile_b=None):
    """x: (batch, input_size) f32. prepped: output of prepare_params()."""
    batch, in_size = x.shape
    out_dtype = x.dtype
    h1p = prepped["w1t"].shape[0]
    h2 = prepped["w2t"].shape[0]
    out_size = prepped["w3"].shape[1]

    if tile_b is None:
        tile_b, n_tiles, padded = _choose_tiling(batch)
    else:
        assert tile_b % 128 == 0
        padded = _round_up(batch, tile_b)
        n_tiles = padded // tile_b

    # Lane-dense (feature, batch) orientation; the bf16 cast rides the
    # transpose so x is streamed (and double-buffered) at half width.
    x_t = x.T.astype(jnp.bfloat16)                         # (in, batch)
    if padded != batch:
        x_t = jnp.pad(x_t, ((0, 0), (0, padded - batch)))  # zero tail columns

    grid = (n_tiles,)
    out_t = pl.pallas_call(
        _fc_mlp_kernel,
        out_shape=jax.ShapeDtypeStruct((out_size, padded), out_dtype),
        grid=grid,
        in_specs=[
            pl.BlockSpec((in_size, tile_b), lambda i: (0, i)),    # x_t streams (bf16)
            pl.BlockSpec((h1p, in_size), lambda i: (0, 0)),       # w1t resident
            pl.BlockSpec((h1p, 1), lambda i: (0, 0)),             # b1
            pl.BlockSpec((h2, h1p), lambda i: (0, 0)),            # w2t resident
            pl.BlockSpec((h2, 1), lambda i: (0, 0)),              # b2
            pl.BlockSpec((h2, out_size), lambda i: (0, 0)),       # w3
            pl.BlockSpec((out_size, 1), lambda i: (0, 0)),        # b3
        ],
        out_specs=pl.BlockSpec((out_size, tile_b), lambda i: (0, i)),  # lane-dense store
        compiler_params=pltpu.CompilerParams(
            dimension_semantics=("parallel",),   # megacore: batch tiles across TCs
        ),
    )(x_t, prepped["w1t"], prepped["b1c"], prepped["w2t"], prepped["b2c"],
      prepped["w3"], prepped["b3c"])

    return out_t.T[:batch]                                 # (batch, out_size)


def fc_model_reference(x, params):
    """Pure-JAX reference mirroring the kernel numerics (bf16 MXU operands,
    f32 accumulation / elementwise)."""
    bf = jnp.bfloat16
    h1 = jnp.dot(x.astype(bf), params["w1"].astype(bf),
                 preferred_element_type=jnp.float32)
    h1 = jnp.maximum(h1 + params["b1"], 0.0)
    h2 = jnp.dot(h1.astype(bf), params["w2"].astype(bf),
                 preferred_element_type=jnp.float32)
    h2 = jnp.maximum(h2 + params["b2"], 0.0)
    return jnp.dot(h2, params["w3"], preferred_element_type=jnp.float32) + params["b3"]


if __name__ == "__main__":
    key = jax.random.PRNGKey(0)
    k_params, k_x = jax.random.split(key)

    batch_size = 512       # auto-tiling picks 2 tiles of 256 -> exercises the
    input_size = 32        # pipeline and (on v7x) both TensorCores
    output_size = 1

    params = init_params(k_params, input_size, output_size)
    prepped = prepare_params(params)
    x = jax.random.normal(k_x, (batch_size, input_size), jnp.float32)

    out = fc_model_forward(x, prepped)
    out = jax.block_until_ready(out)

    ref = fc_model_reference(x, params)
    assert out.shape == (batch_size, output_size), out.shape
    # relative-error friendly check (bf16 matmul error scales with |ref|)
    assert jnp.allclose(out, ref, atol=1e-3, rtol=1e-3), "mismatch vs reference"

    print("KERNEL_OK")
</pallas_src>

<mosaic_0001>
module attributes {stable_mosaic.version = 11 : i64} {
  func.func @_fc_mlp_kernel(%arg0: i32, %arg1: memref<32x256xbf16, #tpu.memory_space<vmem>>, %arg2: memref<256x32xbf16, #tpu.memory_space<vmem>>, %arg3: memref<256x1xf32, #tpu.memory_space<vmem>>, %arg4: memref<20x256xbf16, #tpu.memory_space<vmem>>, %arg5: memref<20x1xf32, #tpu.memory_space<vmem>>, %arg6: memref<20x1xf32, #tpu.memory_space<vmem>>, %arg7: memref<1x1xf32, #tpu.memory_space<vmem>>, %arg8: memref<1x256xf32, #tpu.memory_space<vmem>>) attributes {dimension_semantics = [#tpu.dimension_semantics<parallel>], iteration_bounds = array<i64: 2>, scalar_prefetch = 0 : i64, scratch_operands = 0 : i64, tpu.core_type = #tpu.core_type<tc>, window_params = [{transform_indices = @transform_0, window_bounds = array<i64: 32, 256>}, {pipeline_mode = #tpu.pipeline_mode<synchronous>, transform_indices = @transform_1, window_bounds = array<i64: 256, 32>}, {pipeline_mode = #tpu.pipeline_mode<synchronous>, transform_indices = @transform_2, window_bounds = array<i64: 256, 1>}, {pipeline_mode = #tpu.pipeline_mode<synchronous>, transform_indices = @transform_3, window_bounds = array<i64: 20, 256>}, {pipeline_mode = #tpu.pipeline_mode<synchronous>, transform_indices = @transform_4, window_bounds = array<i64: 20, 1>}, {pipeline_mode = #tpu.pipeline_mode<synchronous>, transform_indices = @transform_5, window_bounds = array<i64: 20, 1>}, {pipeline_mode = #tpu.pipeline_mode<synchronous>, transform_indices = @transform_6, window_bounds = array<i64: 1, 1>}, {transform_indices = @transform_7, window_bounds = array<i64: 1, 256>}]} {
    %c0 = arith.constant 0 : index
    %c0_0 = arith.constant 0 : index
    %0 = vector.load %arg1[%c0, %c0_0] : memref<32x256xbf16, #tpu.memory_space<vmem>>, vector<32x256xbf16>
    %c0_1 = arith.constant 0 : index
    %c0_2 = arith.constant 0 : index
    %1 = vector.load %arg2[%c0_1, %c0_2] : memref<256x32xbf16, #tpu.memory_space<vmem>>, vector<256x32xbf16>
    %cst = arith.constant dense<0.000000e+00> : vector<256x256xf32>
    %2 = tpu.matmul %1, %0, %cst {dimension_numbers = #tpu.dot_dimension_numbers<[1], [0], [0], [1], [0, 0, 1, 1], [], []>} : vector<256x32xbf16>, vector<32x256xbf16>, vector<256x256xf32> -> vector<256x256xf32>
    %c0_3 = arith.constant 0 : index
    %c0_4 = arith.constant 0 : index
    %3 = vector.load %arg3[%c0_3, %c0_4] : memref<256x1xf32, #tpu.memory_space<vmem>>, vector<256x1xf32>
    %4 = vector.broadcast %3 : vector<256x1xf32> to vector<256x256xf32>
    %5 = arith.addf %2, %4 : vector<256x256xf32>
    %cst_5 = arith.constant 0.000000e+00 : f32
    %6 = vector.broadcast %cst_5 : f32 to vector<256x256xf32>
    %7 = arith.maximumf %5, %6 : vector<256x256xf32>
    %c0_6 = arith.constant 0 : index
    %c0_7 = arith.constant 0 : index
    %8 = vector.load %arg4[%c0_6, %c0_7] : memref<20x256xbf16, #tpu.memory_space<vmem>>, vector<20x256xbf16>
    %9 = arith.truncf %7 : vector<256x256xf32> to vector<256x256xbf16>
    %cst_8 = arith.constant dense<0.000000e+00> : vector<20x256xf32>
    %10 = tpu.matmul %8, %9, %cst_8 {dimension_numbers = #tpu.dot_dimension_numbers<[1], [0], [0], [1], [0, 0, 1, 1], [], []>} : vector<20x256xbf16>, vector<256x256xbf16>, vector<20x256xf32> -> vector<20x256xf32>
    %c0_9 = arith.constant 0 : index
    %c0_10 = arith.constant 0 : index
    %11 = vector.load %arg5[%c0_9, %c0_10] : memref<20x1xf32, #tpu.memory_space<vmem>>, vector<20x1xf32>
    %12 = vector.broadcast %11 : vector<20x1xf32> to vector<20x256xf32>
    %13 = arith.addf %10, %12 : vector<20x256xf32>
    %cst_11 = arith.constant 0.000000e+00 : f32
    %14 = vector.broadcast %cst_11 : f32 to vector<20x256xf32>
    %15 = arith.maximumf %13, %14 : vector<20x256xf32>
    %c0_12 = arith.constant 0 : index
    %c0_13 = arith.constant 0 : index
    %16 = vector.load %arg6[%c0_12, %c0_13] : memref<20x1xf32, #tpu.memory_space<vmem>>, vector<20x1xf32>
    %17 = vector.broadcast %16 : vector<20x1xf32> to vector<20x256xf32>
    %18 = arith.mulf %15, %17 : vector<20x256xf32>
    %cst_14 = arith.constant dense<0.000000e+00> : vector<256xf32>
    %19 = vector.multi_reduction <add>, %18, %cst_14 [0] : vector<20x256xf32> to vector<256xf32>
    %20 = vector.shape_cast %19 : vector<256xf32> to vector<1x256xf32>
    %c0_15 = arith.constant 0 : index
    %c0_16 = arith.constant 0 : index
    %21 = vector.load %arg7[%c0_15, %c0_16] : memref<1x1xf32, #tpu.memory_space<vmem>>, vector<1x1xf32>
    %22 = vector.broadcast %21 : vector<1x1xf32> to vector<1x256xf32>
    %23 = arith.addf %20, %22 : vector<1x256xf32>
    %c0_17 = arith.constant 0 : index
    %c0_18 = arith.constant 0 : index
    %24 = vector.load %arg8[%c0_17, %c0_18] : memref<1x256xf32, #tpu.memory_space<vmem>>, vector<1x256xf32>
    tpu.vector_store %arg8[%c0_17, %c0_18], %23 {strides = array<i32>} : memref<1x256xf32, #tpu.memory_space<vmem>>, vector<1x256xf32>,
    return
  }
  func.func @transform_0(%arg0: i32) -> (i32, i32) {
    %c0_i32 = arith.constant 0 : i32
    %c0_i32_0 = arith.constant 0 : i32
    return %c0_i32, %arg0 : i32, i32
  }
  func.func @transform_1(%arg0: i32) -> (i32, i32) {
    %c0_i32 = arith.constant 0 : i32
    %c0_i32_0 = arith.constant 0 : i32
    %c0_i32_1 = arith.constant 0 : i32
    return %c0_i32, %c0_i32_0 : i32, i32
  }
  func.func @transform_2(%arg0: i32) -> (i32, i32) {
    %c0_i32 = arith.constant 0 : i32
    %c0_i32_0 = arith.constant 0 : i32
    %c0_i32_1 = arith.constant 0 : i32
    return %c0_i32, %c0_i32_0 : i32, i32
  }
  func.func @transform_3(%arg0: i32) -> (i32, i32) {
    %c0_i32 = arith.constant 0 : i32
    %c0_i32_0 = arith.constant 0 : i32
    %c0_i32_1 = arith.constant 0 : i32
    return %c0_i32, %c0_i32_0 : i32, i32
  }
  func.func @transform_4(%arg0: i32) -> (i32, i32) {
    %c0_i32 = arith.constant 0 : i32
    %c0_i32_0 = arith.constant 0 : i32
    %c0_i32_1 = arith.constant 0 : i32
    return %c0_i32, %c0_i32_0 : i32, i32
  }
  func.func @transform_5(%arg0: i32) -> (i32, i32) {
    %c0_i32 = arith.constant 0 : i32
    %c0_i32_0 = arith.constant 0 : i32
    %c0_i32_1 = arith.constant 0 : i32
    return %c0_i32, %c0_i32_0 : i32, i32
  }
  func.func @transform_6(%arg0: i32) -> (i32, i32) {
    %c0_i32 = arith.constant 0 : i32
    %c0_i32_0 = arith.constant 0 : i32
    %c0_i32_1 = arith.constant 0 : i32
    return %c0_i32, %c0_i32_0 : i32, i32
  }
  func.func @transform_7(%arg0: i32) -> (i32, i32) {
    %c0_i32 = arith.constant 0 : i32
    %c0_i32_0 = arith.constant 0 : i32
    return %c0_i32, %arg0 : i32, i32
  }
}

</mosaic_0001>

<bundles_post_ra>
// kernel: tpu_custom_call.1
= control target key start
LH: loop header
LB: loop body
LE: loop exit
PB: predicated region body
PF: predicated region fallthrough
CT: control target
= control target key end

     0   :  { %s1799_s0 = inlined_call_operand.vmem [shape: bf16[32,512], index: 0, kind: input, shape index: {}]   ;;  %s1800_s1 = inlined_call_operand.vmem [shape: bf16[256,32], index: 1, kind: input, shape index: {}]   ;;  %s1801_s2 = inlined_call_operand.vmem [shape: f32[256,1], index: 2, kind: input, shape index: {}]   ;;  %s1802_s3 = inlined_call_operand.vmem [shape: bf16[20,256], index: 3, kind: input, shape index: {}]   ;;  %s1803_s4 = inlined_call_operand.vmem [shape: f32[20,1], index: 4, kind: input, shape index: {}]   ;;  %s1804_s5 = inlined_call_operand.vmem [shape: f32[20,1], index: 5, kind: input, shape index: {}]   ;;  %s1805_s6 = inlined_call_operand.<no memory space> [shape: f32[1,1], index: 6, kind: input, shape index: {}]   ;;  %s1806_s7 = inlined_call_operand.hbm [shape: f32[1,512], index: 7, kind: output, shape index: {}]  }
   0x1   :  { %v12_v0 = vstv %s1805_s6 }
   0x2   :  { %13 = vst [vmem:[#allocation2] sm:$0x1] %v12_v0 }
   0x3   :  { %14 = vsyncpa [#allocation5], 0 }
   0x4   :  { %16 = vsyncpa [#allocation5 + $0x1], 0  ;;  %s1484_s26 = smov 0   ;;  %s1486_s27 = smov 0  }
   0x5   :  { %s1488_s28 = smov 0   ;;  %s1490_s29 = smov 0  }
   0x6 LB: > { %s1247_s6 = sadd.s32 4294967295, %s1436_s29   ;;  %s1248_s30 = sadd.s32 4294967294, %s1436_s29   ;;  %s1436_s29 = sphi %s1490_s29, %s1812_s29   ;;  %s1432_s28 = sphi %s1488_s28, %s1811_s28   ;;  %s1428_s27 = sphi %s1486_s27, %s1810_s27   ;;  %s1424_s26 = sphi %s1484_s26, %s1809_s26  }
   0x7   : > { %s1507_s8 = sadd.s32 1, %s1436_s29   ;;  %s29_s9 = sadd.s32 1, %s1432_s28 }
   0x8   : > { %s26_s10 = ssub.s32 %s1436_s29, %s1507_s8  ;;  %p36_p0 = scmp.ne.s32.totalorder %s1432_s28, %s1428_s27 }
   0x9   : > { %p27_p1 = scmp.eq.s32.totalorder %s26_s10, 0  ;;  %p37_p2 = scmp.eq.s32.totalorder %s1436_s29, 0 }
   0xa   : > { %p192_p3 = scmp.eq.s32.totalorder %s1247_s6, 1  ;;  %p197_p4 = scmp.ne.s32.totalorder %s1428_s27, %s1424_s26 }
   0xb   : > { %s1520_s11 = scalar_select %p27_p1, %s1432_s28, %s29_s9  }
   0xc   : > { %p38_p5 = por %p37_p2, %p36_p0  ;;  %p1522_p6 = por %p192_p3, %p36_p0 }
   0xd   : > { %p198_p7 = scmp.eq.s32.totalorder %s1248_s30, 1  ;;  %p1250_p9 = scmp.ge.s32.totalorder %s1436_s29, 2 }
   0xf   : > { %p1526_p8 = por %p198_p7, %p197_p4  ;;  %232 = sbr.rel (%p1250_p9) target bundleno = 29 (0x1d), region = 40 }
  0x16   : > { %235 = sbr.rel (!%p38_p5) target bundleno = 29 (0x1d), region = 44  ;;  %s237_s14 = sand.u32 (%p38_p5), 1, %s1432_s28  }
  0x17   : > { %s1302_s15 = sshll.u32 (%p38_p5), %s1436_s29, 3  ;;  %s1251_s16 = sshll.u32 (%p38_p5), %s237_s14, 5 }
  0x18   : > { %s242_s19 = scalar_lea.vmem (%p38_p5), %s1799_s0, %s1302_s15  ;;  %s239_s20 = scalar_lea.vmem (%p38_p5), [#allocation3], %s1251_s16 }
  0x19   : > { %v276_v1 = vld [vmem:[%s242_s19] sm:$0xff] (%p38_p5)  ;;  %v278_v2 = vld [vmem:[%s242_s19 + $0x10] sm:$0xff] (%p38_p5) }
  0x1a   : > { %v280_v3 = vld [vmem:[%s242_s19 + $0x20] sm:$0xff] (%p38_p5)  ;;  %277 = vst [vmem:[%s239_s20] sm:$0xff] (%p38_p5), %v276_v1  ;;  %279 = vst [vmem:[%s239_s20 + $0x8] sm:$0xff] (%p38_p5), %v278_v2  ;;  %v282_v4 = vld [vmem:[%s242_s19 + $0x30] sm:$0xff] (%p38_p5) }
  0x1b   : > { %281 = vst [vmem:[%s239_s20 + $0x10] sm:$0xff] (%p38_p5), %v280_v3  ;;  %283 = vst [vmem:[%s239_s20 + $0x18] sm:$0xff] (%p38_p5), %v282_v4 }
  0x1d PF: > { %p1254_p10 = scmp.ge.s32.totalorder %s1436_s29, 1  ;;  %p288_p11 = scmp.lt.s32.totalorder %s1436_s29, 3 }
  0x1f   : > { %p289_p12 = pnand %p1254_p10, %p288_p11 }
  0x20   : > { %s1541_s21 = sand.u32 (!%p289_p12), 1, %s1428_s27   ;;  %v1438_v5 = vmov (!%p289_p12), 0   ;;  %v1353_v10 = vld [vmem:[%s1800_s1] sm:$0xff] (!%p289_p12)   ;;  %vm657_vm0 = vcmask (!%p289_p12), 261120   ;;  %v367_v12 = vld [vmem:[%s1801_s2 + $0x10] sm:$0xff] (!%p289_p12)  ;;  %v366_v13 = vld [vmem:[%s1801_s2 + $0x8] sm:$0xff] (!%p289_p12) }
  0x21   : > { %292 = sbr.rel (%p289_p12) target bundleno = 653 (0x28d), region = 82  ;;  %s1255_s22 = sshll.u32 (!%p289_p12), %s1541_s21, 5  ;;  %738 = vmatprep.mubr.bf16.mxu0 (!%p289_p12), %v1438_v5  ;;  %1345 = vset.pattern.permute.xlu0 (!%p289_p12), %v1438_v5  ;;  %v365_v11 = vld [vmem:[%s1801_s2] sm:$0xff] (!%p289_p12)  ;;  %v368_v14 = vld [vmem:[%s1801_s2 + $0x18] sm:$0xff] (!%p289_p12)  ;;  %v1354_v15 = vld [vmem:[%s1800_s1 + $0x8] sm:$0xff] (!%p289_p12)   ;;  %vm1115_vm1 = vcmask (!%p289_p12), 1043456  }
  0x22   : > { %1346 = vset.pattern.permute.xlu1 (!%p289_p12), %v1438_v5  ;;  %s297_s23 = scalar_lea.vmem (!%p289_p12), [#allocation3], %s1255_s22  ;;  %399 = vperm.xlu0 (!%p289_p12), %1345, %v365_v11   ;;  %v369_v16 = vld [vmem:[%s1801_s2 + $0x20] sm:$0xff] (!%p289_p12)  ;;  %v370_v17 = vld [vmem:[%s1801_s2 + $0x28] sm:$0xff] (!%p289_p12)  ;;  %v371_v18 = vld [vmem:[%s1801_s2 + $0x30] sm:$0xff] (!%p289_p12)  ;;  %s1256_s30 = sshll.u32 (!%p289_p12), %s1541_s21, 1 }
  0x23   : > { %v1347_v6 = vld [vmem:[%s297_s23 + $0x4] ss:$8 sps:$4 sm:$0xff] (!%p289_p12)   ;;  %v1349_v7 = vld [vmem:[%s297_s23] ss:$8 sps:$4 sm:$0xff] (!%p289_p12)   ;;  %v1350_v8 = vld [vmem:[%s297_s23 + $0x14] ss:$8 sps:$4 sm:$0xff] (!%p289_p12)   ;;  %409 = vperm.xlu1 (!%p289_p12), %1346, %v367_v12  }
  0x24   : > { %706 = vmatprep.subr.bf16.mxu0 (!%p289_p12), %v1347_v6  ;;  %v1352_v9 = vld [vmem:[%s297_s23 + $0x10] ss:$8 sps:$4 sm:$0xff] (!%p289_p12)   ;;  %v373_v21 = vld [vmem:[%s1801_s2 + $0x40] sm:$0xff] (!%p289_p12)  ;;  %v374_v22 = vld [vmem:[%s1801_s2 + $0x48] sm:$0xff] (!%p289_p12)  ;;  %s1303_s9 = sshll.u32 (!%p289_p12), %s1247_s6, 5  ;;  %s325_s10 = scalar_lea.vmem (!%p289_p12), [#allocation4], %s1256_s30 }
  0x25   : > { %707 = vmatpush1.bf16.msra.mxu0 (!%p289_p12), %v1349_v7  ;;  %v372_v19 = vld [vmem:[%s1801_s2 + $0x38] sm:$0xff] (!%p289_p12)  ;;  %v1355_v20 = vld [vmem:[%s1800_s1 + $0x10] sm:$0xff] (!%p289_p12)   ;;  %v377_v26 = vld [vmem:[%s1801_s2 + $0x60] sm:$0xff] (!%p289_p12)  ;;  %s1183_s14 = sshll.u32 (!%p289_p12), %s325_s10, 4  ;;  %s1755_s17 = scalar_lea.hbm (!%p289_p12), %s1806_s7, %s1303_s9  ;;  %s1757_s14 = int_to_ptr.vmem [resolvable:$true] %s1183_s14 }
  0x26   : > { %708 = vmatprep.subr.bf16.mxu0 (!%p289_p12), %v1350_v8  ;;  %404 = vperm.xlu0 (!%p289_p12), %1345, %v366_v13   ;;  %v375_v23 = vld [vmem:[%s1801_s2 + $0x50] sm:$0xff] (!%p289_p12)  ;;  %v376_v24 = vld [vmem:[%s1801_s2 + $0x58] sm:$0xff] (!%p289_p12)  ;;  %v378_v27 = vld [vmem:[%s1801_s2 + $0x68] sm:$0xff] (!%p289_p12)  ;;  %s1169_s18 = scalar_lea.sflag (!%p289_p12), [#allocation5], %s1541_s21  ;;  %s1374_s19 = scalar_lea.vmem (!%p289_p12), %s1757_s14, 32 }
  0x27   : > { %414 = vperm.xlu1 (!%p289_p12), %1346, %v368_v14   ;;  %v1356_v25 = vld [vmem:[%s1800_s1 + $0x18] sm:$0xff] (!%p289_p12)   ;;  %v379_v28 = vld [vmem:[%s1801_s2 + $0x70] sm:$0xff] (!%p289_p12)  ;;  %v1357_v30 = vld [vmem:[%s1800_s1 + $0x20] sm:$0xff] (!%p289_p12)   ;;  %p1375_p13 = scmp.ne.s32.totalorder (!%p289_p12), %s1757_s14, %s1374_s19  ;;  %s1440_s6 = smov (!%p289_p12), [#allocation4]  }
  0x28   : > { %v380_v29 = vld [vmem:[%s1801_s2 + $0x78] sm:$0xff]  ;;  %v381_v31 = vld [vmem:[%s1801_s2 + $0x80] sm:$0xff]  ;;  %v382_v32 = vld [vmem:[%s1801_s2 + $0x88] sm:$0xff]  ;;  %s1378_s20 = sshll.u32 %s1440_s6, 4  ;;  %s1379_s20 = int_to_ptr.vmem [resolvable:$false] %s1378_s20 }
  0x29   : > { %709 = vmatpush1.bf16.msra.mxu0 %v1352_v9  ;;  %v383_v33 = vld [vmem:[%s1801_s2 + $0x90] sm:$0xff]  ;;  %v384_v34 = vld [vmem:[%s1801_s2 + $0x98] sm:$0xff]  ;;  %v1358_v35 = vld [vmem:[%s1800_s1 + $0x28] sm:$0xff]   ;;  %p1376_p0 = pnand %p1375_p13, %p1522_p6  ;;  %s1380_s22 = scalar_lea.vmem %s1379_s20, 64 }
  0x2a   : > { %419 = vperm.xlu0 %1345, %v369_v16   ;;  %v385_v36 = vld [vmem:[%s1801_s2 + $0xa0] sm:$0xff]  ;;  %v386_v37 = vld [vmem:[%s1801_s2 + $0xa8] sm:$0xff]  ;;  %v387_v38 = vld [vmem:[%s1801_s2 + $0xb0] sm:$0xff]  ;;  %p1381_p2 = scmp.lt.s32.totalorder %s1757_s14, %s1379_s20  ;;  %p1382_p3 = scmp.lt.s32.totalorder %s1380_s22, %s1374_s19 }
  0x2b   : > { %424 = vperm.xlu1 %1346, %v370_v17   ;;  %v388_v39 = vld [vmem:[%s1801_s2 + $0xb8] sm:$0xff]  ;;  %v1359_v40 = vld [vmem:[%s1800_s1 + $0x30] sm:$0xff]   ;;  %v389_v41 = vld [vmem:[%s1801_s2 + $0xc0] sm:$0xff]  ;;  %p1377_p1 = pneg %p1376_p0 }
  0x2c   : > { %1277 = vmatmul.mubr.msk.bf16.vlgmr.msra.gmra.mrb[0].mxu0 %vm657_vm0, %v1353_v10  ;;  %v390_v42 = vld [vmem:[%s1801_s2 + $0xc8] sm:$0xff]  ;;  %v391_v43 = vld [vmem:[%s1801_s2 + $0xd0] sm:$0xff]  ;;  %v392_v44 = vld [vmem:[%s1801_s2 + $0xd8] sm:$0xff]  ;;  %p1383_p4 = por %p1382_p3, %p1381_p2 }
  0x2d   : > { %748 = vmatprep.mubr.bf16.mxu0 %v1438_v5  ;;  %v1360_v45 = vld [vmem:[%s1800_s1 + $0x38] sm:$0xff]   ;;  %v393_v46 = vld [vmem:[%s1801_s2 + $0xe0] sm:$0xff]  ;;  %v394_v47 = vld [vmem:[%s1801_s2 + $0xe8] sm:$0xff] }
  0x2e   : > { %429 = vperm.xlu0 %1345, %v371_v18   ;;  %v395_v48 = vld [vmem:[%s1801_s2 + $0xf0] sm:$0xff]  ;;  %v396_v49 = vld [vmem:[%s1801_s2 + $0xf8] sm:$0xff]  ;;  %v1361_v50 = vld [vmem:[%s1800_s1 + $0x40] sm:$0xff]   ;;  %p1384_p5 = pnand %p1383_p4, %p1377_p1 }
  0x2f   : > { %434 = vperm.xlu1 %1346, %v372_v19   ;;  %v998_v51 = vld [vmem:[%s1803_s4] sm:$0xff]  ;;  %v999_v52 = vld [vmem:[%s1803_s4 + $0x8] sm:$0xff]  ;;  %v1000_v53 = vld [vmem:[%s1803_s4 + $0x10] sm:$0xf] }
  0x30   : > { %v1090_v54 = vld [vmem:[%s1804_s5] sm:$0xff]  ;;  %v1362_v55 = vld [vmem:[%s1800_s1 + $0x48] sm:$0xff]   ;;  %v1092_v57 = vld [vmem:[%s1804_s5 + $0x10] sm:$0xf] }
  0x31   : > { %v1091_v56 = vld [vmem:[%s1804_s5 + $0x8] sm:$0xff]  ;;  %v1133_v58 = vld [vmem:[#allocation2] sm:$0x1]  ;;  %v1363_v59 = vld [vmem:[%s1800_s1 + $0x50] sm:$0xff]  }
  0x32   : > { %439 = vperm.xlu0 %1345, %v373_v21   ;;  %v1364_v60 = vld [vmem:[%s1800_s1 + $0x58] sm:$0xff]   ;;  %v1365_v61 = vld [vmem:[%s1800_s1 + $0x60] sm:$0xff]   ;;  %v1366_v62 = vld [vmem:[%s1800_s1 + $0x68] sm:$0xff]  }
  0x33   : > { %444 = vperm.xlu1 %1346, %v374_v22   ;;  %v1367_v63 = vld [vmem:[%s1800_s1 + $0x70] sm:$0xff]   ;;  %v1368_v0 = vld [vmem:[%s1800_s1 + $0x78] sm:$0xff]   ;;  %v1371_v11 = vld [vmem:[%s1802_s3 + $0x4] ss:$8 sps:$4 sm:$0xff]  }
  0x34   : > { %1278 = vmatmul.mubr.msk.bf16.gmra.mrb[4].mxu0 %vm657_vm0, %v1354_v15  ;;  %1065 = vmatprep.mubr.bf16.mxu1 %v1371_v11 }
  0x35   : > { %758 = vmatprep.mubr.bf16.mxu0 %v1438_v5 }
  0x36   : > { %449 = vperm.xlu0 %1345, %v375_v23  }
  0x37   : > { %454 = vperm.xlu1 %1346, %v376_v24  }
  0x3a   : > { %459 = vperm.xlu0 %1345, %v377_v26  }
  0x3b   : > { %464 = vperm.xlu1 %1346, %v378_v27  }
  0x3c   : > { %1279 = vmatmul.mubr.msk.bf16.gmra.mrb[8].mxu0 %vm657_vm0, %v1355_v20 }
  0x3d   : > { %768 = vmatprep.mubr.bf16.mxu0 %v1438_v5 }
  0x3e   : > { %469 = vperm.xlu0 %1345, %v379_v28  }
  0x3f   : > { %474 = vperm.xlu1 %1346, %v380_v29  }
  0x42   : > { %479 = vperm.xlu0 %1345, %v381_v31  }
  0x43   : > { %484 = vperm.xlu1 %1346, %v382_v32  }
  0x44   : > { %1280 = vmatmul.mubr.msk.bf16.gmra.mrb[12].mxu0 %vm657_vm0, %v1356_v25 }
  0x45   : > { %778 = vmatprep.mubr.bf16.mxu0 %v1438_v5 }
  0x46   : > { %489 = vperm.xlu0 %1345, %v383_v33  }
  0x47   : > { %494 = vperm.xlu1 %1346, %v384_v34  }
  0x4a   : > { %499 = vperm.xlu0 %1345, %v385_v36  }
  0x4b   : > { %504 = vperm.xlu1 %1346, %v386_v37  }
  0x4c   : > { %1281 = vmatmul.mubr.msk.bf16.gmra.mrb[16].mxu0 %vm657_vm0, %v1357_v30 }
  0x4d   : > { %788 = vmatprep.mubr.bf16.mxu0 %v1438_v5 }
  0x4e   : > { %509 = vperm.xlu0 %1345, %v387_v38  }
  0x4f   : > { %514 = vperm.xlu1 %1346, %v388_v39  }
  0x52   : > { %519 = vperm.xlu0 %1345, %v389_v41  }
  0x53   : > { %524 = vperm.xlu1 %1346, %v390_v42  }
  0x54   : > { %1282 = vmatmul.mubr.msk.bf16.gmra.mrb[20].mxu0 %vm657_vm0, %v1358_v35 }
  0x55   : > { %798 = vmatprep.mubr.bf16.mxu0 %v1438_v5 }
  0x56   : > { %529 = vperm.xlu0 %1345, %v391_v43  }
  0x57   : > { %534 = vperm.xlu1 %1346, %v392_v44  }
  0x5a   : > { %539 = vperm.xlu0 %1345, %v393_v46  }
  0x5b   : > { %544 = vperm.xlu1 %1346, %v394_v47  }
  0x5c   : > { %1283 = vmatmul.mubr.msk.bf16.gmra.mrb[24].mxu0 %vm657_vm0, %v1359_v40 }
  0x5d   : > { %808 = vmatprep.mubr.bf16.mxu0 %v1438_v5 }
  0x5e   : > { %549 = vperm.xlu0 %1345, %v395_v48  }
  0x5f   : > { %554 = vperm.xlu1 %1346, %v396_v49  }
  0x62   : > { %1003 = vperm.xlu0 %1345, %v998_v51  }
  0x63   : > { %1008 = vperm.xlu1 %1346, %v999_v52  }
  0x64   : > { %1284 = vmatmul.mubr.msk.bf16.gmra.mrb[28].mxu0 %vm657_vm0, %v1360_v45 }
  0x65   : > { %818 = vmatprep.mubr.bf16.mxu0 %v1438_v5 }
  0x66   : > { %1013 = vperm.xlu0 %1345, %v1000_v53  }
  0x67   : > { %1095 = vperm.xlu1 %1346, %v1090_v54  }
  0x6a   : > { %1100 = vperm.xlu0 %1345, %v1091_v56  }
  0x6b   : > { %1105 = vperm.xlu1 %1346, %v1092_v57  }
  0x6c   : > { %1285 = vmatmul.mubr.msk.bf16.gmra.mrb[32].mxu0 %vm657_vm0, %v1361_v50 }
  0x6d   : > { %828 = vmatprep.mubr.bf16.mxu0 %v1438_v5 }
  0x6e   : > { %1136 = vperm.xlu0 %1345, %v1133_v58  }
  0x74   : > { %1286 = vmatmul.mubr.msk.bf16.gmra.mrb[36].mxu0 %vm657_vm0, %v1362_v55 }
  0x75   : > { %838 = vmatprep.mubr.bf16.mxu0 %v1438_v5 }
  0x7c   : > { %1287 = vmatmul.mubr.msk.bf16.gmra.mrb[40].mxu0 %vm657_vm0, %v1363_v59 }
  0x7d   : > { %848 = vmatprep.mubr.bf16.mxu0 %v1438_v5 }
  0x84   : > { %1288 = vmatmul.mubr.msk.bf16.gmra.mrb[44].mxu0 %vm657_vm0, %v1364_v60 }
  0x85   : > { %858 = vmatprep.mubr.bf16.mxu0 %v1438_v5 }
  0x8c   : > { %1289 = vmatmul.mubr.msk.bf16.gmra.mrb[48].mxu0 %vm657_vm0, %v1365_v61 }
  0x8d   : > { %868 = vmatprep.mubr.bf16.mxu0 %v1438_v5 }
  0x94   : > { %1290 = vmatmul.mubr.msk.bf16.gmra.mrb[52].mxu0 %vm657_vm0, %v1366_v62 }
  0x95   : > { %878 = vmatprep.mubr.bf16.mxu0 %v1438_v5 }
  0x9c   : > { %1291 = vmatmul.mubr.msk.bf16.gmra.mrb[56].mxu0 %vm657_vm0, %v1367_v63 }
  0x9d   : > { %888 = vmatprep.mubr.bf16.mxu0 %v1438_v5 }
  0xa1   : > { %v400_v1 = vpop.permute.xlu0 %399 }
  0xa2   : > { %v410_v5 = vpop.permute.xlu1 %409 }
  0xa4   : > { %1292 = vmatmul.mubr.msk.bf16.gmra.mrb[60].mxu0 %vm657_vm0, %v1368_v0 }
  0xa5   : > { %v405_v6 = vpop.permute.xlu0 %404 }
  0xa6   : > { %v415_v22 = vpop.permute.xlu1 %414 }
  0xa9   : > { %v420_v33 = vpop.permute.xlu0 %419 }
  0xaa   : > { %v425_v38 = vpop.permute.xlu1 %424 }
  0xad   : > { %v430_v49 = vpop.permute.xlu0 %429 }
  0xae   : > { %v435_v54 = vpop.permute.xlu1 %434 }
  0xff   : > { %v740_v2 = vpop.f32.mrb[0].mxu0 }
 0x100   : > { %v741_v3 = vadd.f32 %v740_v2, %v400_v1  ;;  %v742_v4 = vpop.f32.mrb[1].mxu0 }
 0x101   : > { %v743_v7 = vadd.f32 %v742_v4, %v400_v1  ;;  %v744_v8 = vpop.f32.mrb[2].mxu0  ;;  %v440_v1 = vpop.permute.xlu0 %439 }
 0x102   : > { %v745_v9 = vadd.f32 %v744_v8, %v405_v6  ;;  %v746_v10 = vpop.f32.mrb[3].mxu0  ;;  %v899_v13 = vmax.f32 %v741_v3, 0.0 }
 0x103   : > { %v747_v12 = vadd.f32 %v746_v10, %v405_v6  ;;  %v900_v15 = vmax.f32 %v743_v7, 0.0  ;;  %v445_v7 = vpop.permute.xlu1 %444 }
 0x104   : > { %v901_v14 = vmax.f32 %v745_v9, 0.0 }
 0x105   : > { %v902_v16 = vmax.f32 %v747_v12, 0.0 }
 0x106   : > { %v966_v17 = vpack.c.bf16 %v901_v14, %v899_v13 }
 0x107   : > { %v750_v18 = vpop.f32.mrb[4].mxu0  ;;  %v967_v19 = vpack.c.bf16 %v902_v16, %v900_v15 }
 0x108   : > { %v751_v20 = vadd.f32 %v750_v18, %v410_v5  ;;  %v752_v21 = vpop.f32.mrb[5].mxu0 }
 0x109   : > { %v753_v23 = vadd.f32 %v752_v21, %v410_v5  ;;  %v754_v24 = vpop.f32.mrb[6].mxu0  ;;  %1033 = vmatprep.subr.bf16.mxu1 %v967_v19 }
 0x10a   : > { %v755_v25 = vadd.f32 %v754_v24, %v415_v22  ;;  %v756_v26 = vpop.f32.mrb[7].mxu0  ;;  %1034 = vmatpush1.bf16.msra.mxu1 %v966_v17  ;;  %v903_v28 = vmax.f32 %v751_v20, 0.0  ;;  %v450_v17 = vpop.permute.xlu0 %449 }
 0x10b   : > { %v757_v27 = vadd.f32 %v756_v26, %v415_v22  ;;  %v904_v30 = vmax.f32 %v753_v23, 0.0  ;;  %v455_v22 = vpop.permute.xlu1 %454 }
 0x10c   : > { %v905_v29 = vmax.f32 %v755_v25, 0.0 }
 0x10d   : > { %v906_v31 = vmax.f32 %v757_v27, 0.0 }
 0x10e   : > { %v968_v32 = vpack.c.bf16 %v905_v29, %v903_v28 }
 0x10f   : > { %v969_v34 = vpack.c.bf16 %v906_v31, %v904_v30  ;;  %v760_v35 = vpop.f32.mrb[8].mxu0 }
 0x110   : > { %v761_v36 = vadd.f32 %v760_v35, %v420_v33  ;;  %v762_v37 = vpop.f32.mrb[9].mxu0 }
 0x111   : > { %v763_v39 = vadd.f32 %v762_v37, %v420_v33  ;;  %v764_v40 = vpop.f32.mrb[10].mxu0  ;;  %1035 = vmatprep.subr.bf16.mxu1 %v969_v34  ;;  %v460_v33 = vpop.permute.xlu0 %459 }
 0x112   : > { %v765_v41 = vadd.f32 %v764_v40, %v425_v38  ;;  %v766_v42 = vpop.f32.mrb[11].mxu0  ;;  %1036 = vmatpush1.bf16.msra.mxu1 %v968_v32  ;;  %v907_v44 = vmax.f32 %v761_v36, 0.0 }
 0x113   : > { %v767_v43 = vadd.f32 %v766_v42, %v425_v38  ;;  %v908_v46 = vmax.f32 %v763_v39, 0.0  ;;  %v465_v38 = vpop.permute.xlu1 %464 }
 0x114   : > { %v909_v45 = vmax.f32 %v765_v41, 0.0 }
 0x115   : > { %v910_v47 = vmax.f32 %v767_v43, 0.0 }
 0x116   : > { %v970_v48 = vpack.c.bf16 %v909_v45, %v907_v44 }
 0x117   : > { %v971_v50 = vpack.c.bf16 %v910_v47, %v908_v46  ;;  %v770_v51 = vpop.f32.mrb[12].mxu0 }
 0x118   : > { %v771_v52 = vadd.f32 %v770_v51, %v430_v49  ;;  %v772_v53 = vpop.f32.mrb[13].mxu0 }
 0x119   : > { %v773_v55 = vadd.f32 %v772_v53, %v430_v49  ;;  %v774_v56 = vpop.f32.mrb[14].mxu0  ;;  %1037 = vmatprep.subr.bf16.mxu1 %v971_v50  ;;  %v470_v49 = vpop.permute.xlu0 %469 }
 0x11a   : > { %v775_v57 = vadd.f32 %v774_v56, %v435_v54  ;;  %v776_v58 = vpop.f32.mrb[15].mxu0  ;;  %1038 = vmatpush1.bf16.msra.mxu1 %v970_v48  ;;  %v911_v60 = vmax.f32 %v771_v52, 0.0 }
 0x11b   : > { %v777_v59 = vadd.f32 %v776_v58, %v435_v54  ;;  %v912_v62 = vmax.f32 %v773_v55, 0.0  ;;  %v475_v54 = vpop.permute.xlu1 %474 }
 0x11c   : > { %v913_v61 = vmax.f32 %v775_v57, 0.0 }
 0x11d   : > { %v914_v63 = vmax.f32 %v777_v59, 0.0 }
 0x11e   : > { %v972_v0 = vpack.c.bf16 %v913_v61, %v911_v60 }
 0x11f   : > { %v973_v2 = vpack.c.bf16 %v914_v63, %v912_v62  ;;  %v780_v3 = vpop.f32.mrb[16].mxu0 }
 0x120   : > { %v781_v4 = vadd.f32 %v780_v3, %v440_v1  ;;  %v782_v6 = vpop.f32.mrb[17].mxu0 }
 0x121   : > { %v783_v8 = vadd.f32 %v782_v6, %v440_v1  ;;  %v784_v9 = vpop.f32.mrb[18].mxu0  ;;  %1039 = vmatprep.subr.bf16.mxu1 %v973_v2  ;;  %v480_v1 = vpop.permute.xlu0 %479 }
 0x122   : > { %v785_v10 = vadd.f32 %v784_v9, %v445_v7  ;;  %v786_v11 = vpop.f32.mrb[19].mxu0  ;;  %1040 = vmatpush1.bf16.msra.mxu1 %v972_v0  ;;  %v915_v12 = vmax.f32 %v781_v4, 0.0 }
 0x123   : > { %v787_v5 = vadd.f32 %v786_v11, %v445_v7  ;;  %v916_v14 = vmax.f32 %v783_v8, 0.0  ;;  %v485_v7 = vpop.permute.xlu1 %484 }
 0x124   : > { %v917_v13 = vmax.f32 %v785_v10, 0.0 }
 0x125   : > { %v918_v15 = vmax.f32 %v787_v5, 0.0 }
 0x126   : > { %v974_v16 = vpack.c.bf16 %v917_v13, %v915_v12 }
 0x127   : > { %v975_v18 = vpack.c.bf16 %v918_v15, %v916_v14  ;;  %v790_v19 = vpop.f32.mrb[20].mxu0 }
 0x128   : > { %v791_v20 = vadd.f32 %v790_v19, %v450_v17  ;;  %v792_v21 = vpop.f32.mrb[21].mxu0 }
 0x129   : > { %v793_v23 = vadd.f32 %v792_v21, %v450_v17  ;;  %v794_v24 = vpop.f32.mrb[22].mxu0  ;;  %1041 = vmatprep.subr.bf16.mxu1 %v975_v18  ;;  %v490_v17 = vpop.permute.xlu0 %489 }
 0x12a   : > { %v795_v25 = vadd.f32 %v794_v24, %v455_v22  ;;  %v796_v26 = vpop.f32.mrb[23].mxu0  ;;  %1042 = vmatpush1.bf16.msra.mxu1 %v974_v16  ;;  %v919_v28 = vmax.f32 %v791_v20, 0.0 }
 0x12b   : > { %v797_v27 = vadd.f32 %v796_v26, %v455_v22  ;;  %v920_v30 = vmax.f32 %v793_v23, 0.0  ;;  %v495_v22 = vpop.permute.xlu1 %494 }
 0x12c   : > { %v921_v29 = vmax.f32 %v795_v25, 0.0 }
 0x12d   : > { %v922_v31 = vmax.f32 %v797_v27, 0.0 }
 0x12e   : > { %v976_v32 = vpack.c.bf16 %v921_v29, %v919_v28 }
 0x12f   : > { %v977_v34 = vpack.c.bf16 %v922_v31, %v920_v30  ;;  %v800_v35 = vpop.f32.mrb[24].mxu0 }
 0x130   : > { %v801_v36 = vadd.f32 %v800_v35, %v460_v33  ;;  %v802_v37 = vpop.f32.mrb[25].mxu0 }
 0x131   : > { %v803_v39 = vadd.f32 %v802_v37, %v460_v33  ;;  %v804_v40 = vpop.f32.mrb[26].mxu0  ;;  %1043 = vmatprep.subr.bf16.mxu1 %v977_v34  ;;  %v500_v33 = vpop.permute.xlu0 %499 }
 0x132   : > { %v805_v41 = vadd.f32 %v804_v40, %v465_v38  ;;  %v806_v42 = vpop.f32.mrb[27].mxu0  ;;  %1044 = vmatpush1.bf16.msra.mxu1 %v976_v32  ;;  %v923_v44 = vmax.f32 %v801_v36, 0.0 }
 0x133   : > { %v807_v43 = vadd.f32 %v806_v42, %v465_v38  ;;  %v924_v46 = vmax.f32 %v803_v39, 0.0  ;;  %v505_v38 = vpop.permute.xlu1 %504 }
 0x134   : > { %v925_v45 = vmax.f32 %v805_v41, 0.0 }
 0x135   : > { %v926_v47 = vmax.f32 %v807_v43, 0.0 }
 0x136   : > { %v978_v48 = vpack.c.bf16 %v925_v45, %v923_v44 }
 0x137   : > { %v979_v50 = vpack.c.bf16 %v926_v47, %v924_v46  ;;  %v810_v51 = vpop.f32.mrb[28].mxu0 }
 0x138   : > { %v811_v52 = vadd.f32 %v810_v51, %v470_v49  ;;  %v812_v53 = vpop.f32.mrb[29].mxu0 }
 0x139   : > { %v813_v55 = vadd.f32 %v812_v53, %v470_v49  ;;  %v814_v56 = vpop.f32.mrb[30].mxu0  ;;  %1045 = vmatprep.subr.bf16.mxu1 %v979_v50  ;;  %v510_v49 = vpop.permute.xlu0 %509 }
 0x13a   : > { %v815_v57 = vadd.f32 %v814_v56, %v475_v54  ;;  %v816_v58 = vpop.f32.mrb[31].mxu0  ;;  %1046 = vmatpush1.bf16.msra.mxu1 %v978_v48  ;;  %v927_v60 = vmax.f32 %v811_v52, 0.0 }
 0x13b   : > { %v817_v59 = vadd.f32 %v816_v58, %v475_v54  ;;  %v928_v62 = vmax.f32 %v813_v55, 0.0  ;;  %v515_v54 = vpop.permute.xlu1 %514 }
 0x13c   : > { %v929_v61 = vmax.f32 %v815_v57, 0.0 }
 0x13d   : > { %v930_v63 = vmax.f32 %v817_v59, 0.0 }
 0x13e   : > { %v980_v0 = vpack.c.bf16 %v929_v61, %v927_v60 }
 0x13f   : > { %v981_v2 = vpack.c.bf16 %v930_v63, %v928_v62  ;;  %v820_v3 = vpop.f32.mrb[32].mxu0 }
 0x140   : > { %v821_v4 = vadd.f32 %v820_v3, %v480_v1  ;;  %v822_v6 = vpop.f32.mrb[33].mxu0 }
 0x141   : > { %v823_v8 = vadd.f32 %v822_v6, %v480_v1  ;;  %v824_v9 = vpop.f32.mrb[34].mxu0  ;;  %1047 = vmatprep.subr.bf16.mxu1 %v981_v2  ;;  %v520_v1 = vpop.permute.xlu0 %519 }
 0x142   : > { %v825_v10 = vadd.f32 %v824_v9, %v485_v7  ;;  %v826_v11 = vpop.f32.mrb[35].mxu0  ;;  %1048 = vmatpush1.bf16.msra.mxu1 %v980_v0  ;;  %v931_v12 = vmax.f32 %v821_v4, 0.0 }
 0x143   : > { %v827_v5 = vadd.f32 %v826_v11, %v485_v7  ;;  %v932_v14 = vmax.f32 %v823_v8, 0.0  ;;  %v525_v7 = vpop.permute.xlu1 %524 }
 0x144   : > { %v933_v13 = vmax.f32 %v825_v10, 0.0 }
 0x145   : > { %v934_v15 = vmax.f32 %v827_v5, 0.0 }
 0x146   : > { %v982_v16 = vpack.c.bf16 %v933_v13, %v931_v12 }
 0x147   : > { %v983_v18 = vpack.c.bf16 %v934_v15, %v932_v14  ;;  %v830_v19 = vpop.f32.mrb[36].mxu0 }
 0x148   : > { %v831_v20 = vadd.f32 %v830_v19, %v490_v17  ;;  %v832_v21 = vpop.f32.mrb[37].mxu0 }
 0x149   : > { %v833_v23 = vadd.f32 %v832_v21, %v490_v17  ;;  %v834_v24 = vpop.f32.mrb[38].mxu0  ;;  %1049 = vmatprep.subr.bf16.mxu1 %v983_v18  ;;  %v530_v17 = vpop.permute.xlu0 %529 }
 0x14a   : > { %v835_v25 = vadd.f32 %v834_v24, %v495_v22  ;;  %v836_v26 = vpop.f32.mrb[39].mxu0  ;;  %1050 = vmatpush1.bf16.msra.mxu1 %v982_v16  ;;  %v935_v28 = vmax.f32 %v831_v20, 0.0 }
 0x14b   : > { %v837_v27 = vadd.f32 %v836_v26, %v495_v22  ;;  %v936_v30 = vmax.f32 %v833_v23, 0.0  ;;  %v535_v22 = vpop.permute.xlu1 %534 }
 0x14c   : > { %v937_v29 = vmax.f32 %v835_v25, 0.0 }
 0x14d   : > { %v938_v31 = vmax.f32 %v837_v27, 0.0 }
 0x14e   : > { %v984_v32 = vpack.c.bf16 %v937_v29, %v935_v28 }
 0x14f   : > { %v985_v34 = vpack.c.bf16 %v938_v31, %v936_v30  ;;  %v840_v35 = vpop.f32.mrb[40].mxu0 }
 0x150   : > { %v841_v36 = vadd.f32 %v840_v35, %v500_v33  ;;  %v842_v37 = vpop.f32.mrb[41].mxu0 }
 0x151   : > { %v843_v39 = vadd.f32 %v842_v37, %v500_v33  ;;  %v844_v40 = vpop.f32.mrb[42].mxu0  ;;  %1051 = vmatprep.subr.bf16.mxu1 %v985_v34  ;;  %v540_v33 = vpop.permute.xlu0 %539 }
 0x152   : > { %v845_v41 = vadd.f32 %v844_v40, %v505_v38  ;;  %v846_v42 = vpop.f32.mrb[43].mxu0  ;;  %1052 = vmatpush1.bf16.msra.mxu1 %v984_v32  ;;  %v939_v44 = vmax.f32 %v841_v36, 0.0 }
 0x153   : > { %v847_v43 = vadd.f32 %v846_v42, %v505_v38  ;;  %v940_v46 = vmax.f32 %v843_v39, 0.0  ;;  %v545_v38 = vpop.permute.xlu1 %544 }
 0x154   : > { %v941_v45 = vmax.f32 %v845_v41, 0.0 }
 0x155   : > { %v942_v47 = vmax.f32 %v847_v43, 0.0 }
 0x156   : > { %v986_v48 = vpack.c.bf16 %v941_v45, %v939_v44 }
 0x157   : > { %v987_v50 = vpack.c.bf16 %v942_v47, %v940_v46  ;;  %v850_v51 = vpop.f32.mrb[44].mxu0 }
 0x158   : > { %v851_v52 = vadd.f32 %v850_v51, %v510_v49  ;;  %v852_v53 = vpop.f32.mrb[45].mxu0 }
 0x159   : > { %v853_v55 = vadd.f32 %v852_v53, %v510_v49  ;;  %v854_v56 = vpop.f32.mrb[46].mxu0  ;;  %1053 = vmatprep.subr.bf16.mxu1 %v987_v50  ;;  %v550_v49 = vpop.permute.xlu0 %549 }
 0x15a   : > { %v855_v57 = vadd.f32 %v854_v56, %v515_v54  ;;  %v856_v58 = vpop.f32.mrb[47].mxu0  ;;  %1054 = vmatpush1.bf16.msra.mxu1 %v986_v48  ;;  %v943_v60 = vmax.f32 %v851_v52, 0.0 }
 0x15b   : > { %v857_v59 = vadd.f32 %v856_v58, %v515_v54  ;;  %v944_v62 = vmax.f32 %v853_v55, 0.0  ;;  %v555_v54 = vpop.permute.xlu1 %554 }
 0x15c   : > { %v945_v61 = vmax.f32 %v855_v57, 0.0 }
 0x15d   : > { %v946_v63 = vmax.f32 %v857_v59, 0.0 }
 0x15e   : > { %v988_v0 = vpack.c.bf16 %v945_v61, %v943_v60 }
 0x15f   : > { %v989_v2 = vpack.c.bf16 %v946_v63, %v944_v62  ;;  %v860_v3 = vpop.f32.mrb[48].mxu0 }
 0x160   : > { %v861_v4 = vadd.f32 %v860_v3, %v520_v1  ;;  %v862_v6 = vpop.f32.mrb[49].mxu0  ;;  %v1369_v3 = vld [vmem:[%s1802_s3] ss:$8 sps:$4 sm:$0xff]  }
 0x161   : > { %v863_v8 = vadd.f32 %v862_v6, %v520_v1  ;;  %v864_v9 = vpop.f32.mrb[50].mxu0  ;;  %1055 = vmatprep.subr.bf16.mxu1 %v989_v2  ;;  %v965_v2 = vld [vmem:[%s1802_s3 + $0x10] sm:$0x33] }
 0x162   : > { %v865_v10 = vadd.f32 %v864_v9, %v525_v7  ;;  %v866_v11 = vpop.f32.mrb[51].mxu0  ;;  %1056 = vmatpush1.bf16.msra.mxu1 %v988_v0  ;;  %v947_v12 = vmax.f32 %v861_v4, 0.0  ;;  %v1296_v4 = vcombine.high %v965_v2, %v965_v2  ;;  %v1295_v6 = vcombine.low %v965_v2, %v965_v2 }
 0x163   : > { %v867_v5 = vadd.f32 %v866_v11, %v525_v7  ;;  %v948_v14 = vmax.f32 %v863_v8, 0.0  ;;  %v1004_v7 = vpop.permute.xlu0 %1003  ;;  %v1009_v8 = vpop.permute.xlu1 %1008 }
 0x164   : > { %v949_v13 = vmax.f32 %v865_v10, 0.0 }
 0x165   : > { %v950_v15 = vmax.f32 %v867_v5, 0.0 }
 0x166   : > { %v990_v16 = vpack.c.bf16 %v949_v13, %v947_v12 }
 0x167   : > { %v991_v18 = vpack.c.bf16 %v950_v15, %v948_v14  ;;  %v870_v19 = vpop.f32.mrb[52].mxu0  ;;  %v1014_v9 = vpop.permute.xlu0 %1013 }
 0x168   : > { %v871_v20 = vadd.f32 %v870_v19, %v530_v17  ;;  %v872_v21 = vpop.f32.mrb[53].mxu0 }
 0x169   : > { %v873_v23 = vadd.f32 %v872_v21, %v530_v17  ;;  %v874_v24 = vpop.f32.mrb[54].mxu0  ;;  %1057 = vmatprep.subr.bf16.mxu1 %v991_v18  ;;  %v1096_v21 = vpop.permute.xlu1 %1095 }
 0x16a   : > { %v875_v25 = vadd.f32 %v874_v24, %v535_v22  ;;  %v876_v26 = vpop.f32.mrb[55].mxu0  ;;  %1058 = vmatpush1.bf16.msra.mxu1 %v990_v16  ;;  %v951_v28 = vmax.f32 %v871_v20, 0.0 }
 0x16b   : > { %v877_v27 = vadd.f32 %v876_v26, %v535_v22  ;;  %v952_v30 = vmax.f32 %v873_v23, 0.0  ;;  %v1101_v20 = vpop.permute.xlu0 %1100 }
 0x16c   : > { %v953_v29 = vmax.f32 %v875_v25, 0.0 }
 0x16d   : > { %v954_v31 = vmax.f32 %v877_v27, 0.0 }
 0x16e   : > { %v992_v32 = vpack.c.bf16 %v953_v29, %v951_v28 }
 0x16f   : > { %v993_v34 = vpack.c.bf16 %v954_v31, %v952_v30  ;;  %v880_v35 = vpop.f32.mrb[56].mxu0 }
 0x170   : > { %v881_v36 = vadd.f32 %v880_v35, %v540_v33  ;;  %v882_v37 = vpop.f32.mrb[57].mxu0 }
 0x171   : > { %v883_v39 = vadd.f32 %v882_v37, %v540_v33  ;;  %v884_v40 = vpop.f32.mrb[58].mxu0  ;;  %1059 = vmatprep.subr.bf16.mxu1 %v993_v34 }
 0x172   : > { %v885_v41 = vadd.f32 %v884_v40, %v545_v38  ;;  %v886_v42 = vpop.f32.mrb[59].mxu0  ;;  %1060 = vmatpush1.bf16.msra.mxu1 %v992_v32  ;;  %v955_v44 = vmax.f32 %v881_v36, 0.0  ;;  %v1106_v36 = vpop.permute.xlu1 %1105 }
 0x173   : > { %v887_v43 = vadd.f32 %v886_v42, %v545_v38  ;;  %v956_v46 = vmax.f32 %v883_v39, 0.0 }
 0x174   : > { %v957_v45 = vmax.f32 %v885_v41, 0.0  ;;  %v1139_v41 = vlaneseq }
 0x175   : > { %v958_v47 = vmax.f32 %v887_v43, 0.0 }
 0x176   : > { %v994_v48 = vpack.c.bf16 %v957_v45, %v955_v44  ;;  %vm1165_vm2 = vcmp.lt.s32.totalorder %v1139_v41, 256 }
 0x177   : > { %v995_v50 = vpack.c.bf16 %v958_v47, %v956_v46  ;;  %v890_v51 = vpop.f32.mrb[60].mxu0  ;;  %v1140_v47 = vshrl.u32 %v1139_v41, 7 }
 0x178   : > { %v891_v52 = vadd.f32 %v890_v51, %v550_v49  ;;  %v892_v53 = vpop.f32.mrb[61].mxu0  ;;  %v1439_v51 = vmov 1966171168  }
 0x179   : > { %v893_v55 = vadd.f32 %v892_v53, %v550_v49  ;;  %v894_v56 = vpop.f32.mrb[62].mxu0  ;;  %1061 = vmatprep.subr.bf16.mxu1 %v995_v50 }
 0x17a   : > { %v895_v57 = vadd.f32 %v894_v56, %v555_v54  ;;  %v896_v58 = vpop.f32.mrb[63].mxu0  ;;  %1062 = vmatpush1.bf16.msra.mxu1 %v994_v48  ;;  %v959_v60 = vmax.f32 %v891_v52, 0.0  ;;  %v1149_v52 = vunpack.c.l.s4 %v1439_v51  ;;  %v1137_v56 = vpop.permute.xlu0 %1136 }
 0x17b   : > { %v897_v59 = vadd.f32 %v896_v58, %v555_v54  ;;  %v960_v62 = vmax.f32 %v893_v55, 0.0  ;;  %v1141_v54 = vsub.s32 0, %v1140_v47 }
 0x17c   : > { %v961_v61 = vmax.f32 %v895_v57, 0.0 }
 0x17d   : > { %v962_v63 = vmax.f32 %v897_v59, 0.0  ;;  %v1150_v59 = vunpack.c.0.s8 %v1149_v52 }
 0x17e   : > { %v996_v0 = vpack.c.bf16 %v961_v61, %v959_v60  ;;  %v1142_v61 = vrot.slane %v1137_v56, %v1141_v54 }
 0x17f   : > { %v997_v1 = vpack.c.bf16 %v962_v63, %v960_v62 }
 0x181   : > { %1063 = vmatprep.subr.bf16.mxu1 %v997_v1  ;;  %v1153_v1 = vsub.s32 %v1150_v59, %v1140_v47 }
 0x182   : > { %1064 = vmatpush1.bf16.msra.mxu1 %v996_v0 }
 0x185   : > { %1066 = vmatmul.mubr.bf16.vlgmr.msra.gmra.mrb[0].mxu1 %v1369_v3 }
 0x186   : > { %1075 = vmatprep.mubr.bf16.mxu1 %v1296_v4 }
 0x18d   : > { %1076 = vmatmul.mubr.bf16.gmra.mrb[4].mxu1 %v1295_v6 }
 0x258   : > { %v1067_v10 = vpop.f32.mrb[0].mxu1 }
 0x259   : > { %v1068_v11 = vadd.f32 %v1067_v10, %v1004_v7  ;;  %v1069_v5 = vpop.f32.mrb[1].mxu1 }
 0x25a   : > { %v1070_v12 = vadd.f32 %v1069_v5, %v1004_v7  ;;  %v1071_v13 = vpop.f32.mrb[2].mxu1 }
 0x25b   : > { %v1084_v14 = vmax.f32 %v1068_v11, 0.0  ;;  %v1072_v15 = vadd.f32 %v1071_v13, %v1009_v8  ;;  %v1073_v16 = vpop.f32.mrb[3].mxu1 }
 0x25c   : > { %v1085_v17 = vmax.f32 %v1070_v12, 0.0  ;;  %v1074_v18 = vadd.f32 %v1073_v16, %v1009_v8 }
 0x25d   : > { %v1086_v19 = vmax.f32 %v1072_v15, 0.0  ;;  %v1108_v23 = vmul.f32 %v1096_v21, %v1084_v14 }
 0x25e   : > { %v1087_v22 = vmax.f32 %v1074_v18, 0.0  ;;  %v1109_v25 = vmul.f32 %v1096_v21, %v1085_v17 }
 0x25f   : > { %v1110_v24 = vmul.f32 %v1101_v20, %v1086_v19 }
 0x260   : > { %v1111_v26 = vmul.f32 %v1101_v20, %v1087_v22  ;;  %v1077_v27 = vpop.f32.mrb[4].mxu1 }
 0x261   : > { %v1114_v28 = vadd.f32 %v1110_v24, %v1108_v23  ;;  %v1078_v29 = vadd.f32 %v1077_v27, %v1014_v9  ;;  %v1079_v30 = vpop.f32.mrb[5].mxu1 }
 0x262   : > { %v1124_v31 = vadd.f32 %v1111_v26, %v1109_v25  ;;  %v1080_v32 = vadd.f32 %v1079_v30, %v1014_v9  ;;  %v1081_v33 = vpop.f32.mrb[6].mxu1 }
 0x263   : > { %v1088_v34 = vmax.f32 %v1078_v29, 0.0  ;;  %v1082_v35 = vpop.f32.mrb[7].mxu1 }
 0x264   : > { %v1089_v37 = vmax.f32 %v1080_v32, 0.0 }
 0x265   : > { %v1112_v38 = vmul.f32 %v1106_v36, %v1088_v34 }
 0x266   : > { %v1113_v39 = vmul.f32 %v1106_v36, %v1089_v37 }
 0x267   : > { %v1116_v40 = vsel %vm1115_vm1, %v1112_v38, 0.0 }
 0x268   : > { %v1117_v42 = vadd.f32 %v1116_v40, %v1114_v28  ;;  %v1125_v43 = vsel %vm1115_vm1, %v1113_v39, 0.0 }
 0x269   : > { %v1126_v44 = vadd.f32 %v1125_v43, %v1124_v31 }
 0x26a   : > { %v1118_v45 = vrot.slane %v1117_v42, 4 }
 0x26b   : > { %v1127_v46 = vrot.slane %v1126_v44, 4 }
 0x26c   : > { %v1119_v48 = vadd.f32 %v1118_v45, %v1117_v42 }
 0x26d   : > { %v1128_v49 = vadd.f32 %v1127_v46, %v1126_v44 }
 0x26e   : > { %v1120_v50 = vrot.slane %v1119_v48, 2 }
 0x26f   : > { %v1129_v53 = vrot.slane %v1128_v49, 2 }
 0x270   : > { %v1121_v55 = vadd.f32 %v1120_v50, %v1119_v48 }
 0x271   : > { %v1130_v57 = vadd.f32 %v1129_v53, %v1128_v49 }
 0x272   : > { %v1122_v58 = vrot.slane %v1121_v55, 1 }
 0x273   : > { %v1131_v60 = vrot.slane %v1130_v57, 1 }
 0x274   : > { %v1123_v62 = vadd.f32 %v1122_v58, %v1121_v55 }
 0x275   : > { %v1132_v63 = vadd.f32 %v1131_v60, %v1130_v57 }
 0x276   : > { %v1143_v0 = vadd.f32 %v1142_v61, %v1123_v62 }
 0x277   : > { %v1144_v2 = vadd.f32 %v1142_v61, %v1132_v63 }
 0x279   : > { %v1147_v3 = vcombine.low %v1143_v0, %v1144_v2 }
 0x27b   : > { %v1154_v4 = vrot.slane %v1147_v3, %v1153_v1 }
 0x27d   : > { %v1161_v6 = vrot.slane %v1154_v4, %v1153_v1 }
 0x27f   : > { %1167 = vst.msk [vmem:[%s325_s10] sm:$0x3] %vm1165_vm2, %v1161_v6 }
 0x280   : > { %1387 = shalt.err (!%p1384_p5)
}
 0x281   : > { %s1388_s21 = scalar_lea.hbm %s1755_s17, 32  ;;  %s1392_s25 = scalar_lea.hbm %s1806_s7, 64 }
 0x282   : > { %p1389_p7 = scmp.ne.s32.totalorder %s1755_s17, %s1388_s21  ;;  %p1393_p12 = scmp.lt.u32.totalorder %s1755_s17, %s1806_s7 }
 0x283   : > { %p1394_p13 = scmp.lt.u32.totalorder %s1392_s25, %s1388_s21  ;;  %p1396_p1 = scmp.lt.u32.totalorder %s1388_s21, %s1755_s17 }
 0x284   : > { %p1390_p10 = pnand %p1389_p7, %p1522_p6 }
 0x285   : > { %p1395_p0 = por %p1394_p13, %p1393_p12 }
 0x286   : > { %p1391_p11 = pneg %p1390_p10 }
 0x287   : > { %p1397_p2 = por %p1396_p1, %p1395_p0 }
 0x289   : > { %p1398_p3 = pnand %p1397_p2, %p1391_p11 }
 0x28b   : > { %1401 = shalt.err (!%p1398_p3)
}
 0x28c   : > { %1304 = dma.vmem_to_hbm [thread:$0]  (%p1522_p6), %s1757_s14, 32, %s1755_s17, %s1169_s18  }
 0x28d PF: > { %s1195_s10 = sand.u32 1, %s1424_s26   ;;  %p1307_p4 = pnand %p1250_p9, %p1526_p8 }
 0x28e   : > { %s1196_s15 = scalar_lea.sflag [#allocation5], %s1195_s10 }
 0x28f   : > { %1419 = dma.done.wait (!%p1307_p4), %s1196_s15, 32  }
 0x290   : > { %1421 = vsyncadd (!%p1307_p4), %s1196_s15, 4294967264  ;;  %p19_p5 = scmp.ge.s32.totalorder %s1507_s8, 4   ;;  %s1809_s26 = smov %s1428_s27 }
 0x291   : > { %s1810_s27 = smov %s1432_s28  ;;  %s1811_s28 = smov %s1520_s11 }
 0x292   : > { %s1812_s29 = smov %s1507_s8  ;;  %21 = sbr.rel (!%p19_p5) target bundleno = 6 (0x6), region = 126 }
 0x299   :  { %1201 = vsyncpa [#allocation5], 1 }
 0x29a   :  { %1203 = vsyncpa [#allocation5 + $0x1], 1 }

</bundles_post_ra>
